<compile_context>
chip_gen: v6e
topology: v6e:2x2x1
jax: 0.10.0
libtpu: 0.0.40
codegen_flags: <defaults>
</compile_context>

<pallas_src>
import functools

import jax
import jax.numpy as jnp
from jax.experimental import pallas as pl
from jax.experimental.pallas import tpu as pltpu

_LANE = 128


def _round_up(a, b):
    return (a + b - 1) // b * b


def _mlp_kernel(x_ref, w1_ref, b1_ref, w2_ref, b2_ref, o_ref, acc_ref):
    j = pl.program_id(1)

    @pl.when(j == 0)
    def _init():
        # Fold b2 into the accumulator init: one broadcast per row tile,
        # instead of a bias add on every M step.
        acc_ref[...] = jnp.broadcast_to(
            b2_ref[...].astype(jnp.float32), acc_ref.shape)

    # linear_1 slab: (tm, H) @ (H, tn) -> (tm, tn).
    # Operands stay in native dtype (bf16 goes straight to the MXU);
    # accumulate in f32.
    h = jnp.dot(x_ref[...], w1_ref[...], preferred_element_type=jnp.float32)
    h = h + b1_ref[...].astype(jnp.float32)

    # GELU (exact, erf-based — matches torch.nn.GELU default), in f32.
    h = 0.5 * h * (1.0 + jax.lax.erf(h * jnp.float32(0.7071067811865476)))
    # dropout_1: identity (eval mode)

    # linear_2 partial sum over the M axis: (tm, tn) @ (tn, H) accumulated.
    acc_ref[...] += jnp.dot(h.astype(w2_ref.dtype), w2_ref[...],
                            preferred_element_type=jnp.float32)

    # dropout_2: identity (eval mode)
    @pl.when(j == pl.num_programs(1) - 1)
    def _finalize():
        o_ref[...] = acc_ref[...].astype(o_ref.dtype)


@functools.partial(jax.jit, static_argnames=("row_tile", "mlp_tile"))
def mlp_pallas(x, w1, b1, w2, b2, *, row_tile=512, mlp_tile=512):
    """x: (B, S, H) -> (B, S, H).  w1: (H, M), b1: (M,), w2: (M, H), b2: (H,)."""
    B, S, H = x.shape
    M = w1.shape[1]
    rows = B * S
    x2d = x.reshape(rows, H)

    # ---- row tiling: pad rows up to a tile multiple (no divisibility assert)
    sub = 16 if x.dtype == jnp.bfloat16 else 8
    tm = min(int(row_tile), _round_up(rows, sub))
    tm = _round_up(tm, sub)
    rows_pad = _round_up(rows, tm)
    if rows_pad != rows:
        x2d = jnp.pad(x2d, ((0, rows_pad - rows), (0, 0)))

    # ---- M-axis tiling: stream weight slabs instead of full-resident w1/w2.
    # Zero-padded M columns/rows contribute exactly 0 to the output.
    if M <= mlp_tile:
        tn, m_pad = M, M
    else:
        tn = _round_up(int(mlp_tile), _LANE)
        m_pad = _round_up(M, tn)
    if m_pad != M:
        w1 = jnp.pad(w1, ((0, 0), (0, m_pad - M)))
        b1 = jnp.pad(b1, ((0, m_pad - M),))
        w2 = jnp.pad(w2, ((0, m_pad - M), (0, 0)))

    b1_2d = b1.reshape(1, m_pad)
    b2_2d = b2.reshape(1, H)

    grid = (rows_pad // tm, m_pad // tn)

    out2d = pl.pallas_call(
        _mlp_kernel,
        out_shape=jax.ShapeDtypeStruct((rows_pad, H), x.dtype),
        grid_spec=pltpu.PrefetchScalarGridSpec(
            num_scalar_prefetch=0,
            grid=grid,
            in_specs=[
                pl.BlockSpec((tm, H), lambda i, j: (i, 0)),   # x row tile
                pl.BlockSpec((H, tn), lambda i, j: (0, j)),   # w1 slab
                pl.BlockSpec((1, tn), lambda i, j: (0, j)),   # b1 slab
                pl.BlockSpec((tn, H), lambda i, j: (j, 0)),   # w2 slab
                pl.BlockSpec((1, H),  lambda i, j: (0, 0)),   # b2
            ],
            out_specs=pl.BlockSpec((tm, H), lambda i, j: (i, 0)),
            scratch_shapes=[pltpu.VMEM((tm, H), jnp.float32)],
        ),
        compiler_params=pltpu.CompilerParams(
            dimension_semantics=("parallel", "arbitrary"),
            vmem_limit_bytes=48 * 1024 * 1024,
        ),
    )(x2d, w1, b1_2d, w2, b2_2d)

    if rows_pad != rows:
        out2d = out2d[:rows]
    return out2d.reshape(B, S, H)


def _reference(x, w1, b1, w2, b2):
    h = x @ w1 + b1
    h = 0.5 * h * (1.0 + jax.lax.erf(h / jnp.sqrt(2.0)))
    return h @ w2 + b2


if __name__ == "__main__":
    # Small shapes implied by the module: tokens x hidden_dim, mlp_dim expansion.
    B, S = 2, 8          # batch, sequence length
    hidden_dim = 32
    mlp_dim = 64

    key = jax.random.PRNGKey(0)
    kx, k1, k2, k3, k4 = jax.random.split(key, 5)

    x = jax.random.normal(kx, (B, S, hidden_dim), dtype=jnp.float32)

    # Deterministic parameter init (PyTorch-Linear-like uniform scale).
    lim1 = 1.0 / jnp.sqrt(hidden_dim)
    lim2 = 1.0 / jnp.sqrt(mlp_dim)
    w1 = jax.random.uniform(k1, (hidden_dim, mlp_dim), jnp.float32, -lim1, lim1)
    b1 = jax.random.uniform(k2, (mlp_dim,), jnp.float32, -lim1, lim1)
    w2 = jax.random.uniform(k3, (mlp_dim, hidden_dim), jnp.float32, -lim2, lim2)
    b2 = jax.random.uniform(k4, (hidden_dim,), jnp.float32, -lim2, lim2)

    out = mlp_pallas(x, w1, b1, w2, b2)
    out = jax.block_until_ready(out)

    ref = _reference(x.reshape(-1, hidden_dim), w1, b1, w2, b2).reshape(B, S, hidden_dim)
    assert out.shape == (B, S, hidden_dim)
    assert jnp.allclose(out, ref, atol=1e-5, rtol=1e-5), "mismatch vs reference"

    print("KERNEL_OK")
</pallas_src>

<mosaic_0001>
module attributes {stable_mosaic.version = 11 : i64} {
  func.func @_mlp_kernel(%arg0: i32, %arg1: i32, %arg2: memref<16x32xf32, #tpu.memory_space<vmem>>, %arg3: memref<32x64xf32, #tpu.memory_space<vmem>>, %arg4: memref<1x64xf32, #tpu.memory_space<vmem>>, %arg5: memref<64x32xf32, #tpu.memory_space<vmem>>, %arg6: memref<1x32xf32, #tpu.memory_space<vmem>>, %arg7: memref<16x32xf32, #tpu.memory_space<vmem>>, %arg8: memref<16x32xf32, #tpu.memory_space<vmem>>) attributes {dimension_semantics = [#tpu.dimension_semantics<parallel>, #tpu.dimension_semantics<arbitrary>], iteration_bounds = array<i64: 1, 1>, scalar_prefetch = 0 : i64, scratch_operands = 1 : i64, tpu.core_type = #tpu.core_type<tc>, window_params = [{transform_indices = @transform_0, window_bounds = array<i64: 16, 32>}, {transform_indices = @transform_1, window_bounds = array<i64: 32, 64>}, {transform_indices = @transform_2, window_bounds = array<i64: 1, 64>}, {transform_indices = @transform_3, window_bounds = array<i64: 64, 32>}, {pipeline_mode = #tpu.pipeline_mode<synchronous>, transform_indices = @transform_4, window_bounds = array<i64: 1, 32>}, {transform_indices = @transform_5, window_bounds = array<i64: 16, 32>}]} {
    %c0_i32 = arith.constant 0 : i32
    %0 = arith.cmpi eq, %arg1, %c0_i32 : i32
    %1 = arith.extui %0 : i1 to i32
    %c0_i32_0 = arith.constant 0 : i32
    %2 = arith.cmpi ne, %1, %c0_i32_0 : i32
    scf.if %2 {
      %c0_18 = arith.constant 0 : index
      %c0_19 = arith.constant 0 : index
      %25 = vector.load %arg6[%c0_18, %c0_19] : memref<1x32xf32, #tpu.memory_space<vmem>>, vector<1x32xf32>
      %26 = vector.shape_cast %25 : vector<1x32xf32> to vector<1x32xf32>
      %27 = vector.broadcast %26 : vector<1x32xf32> to vector<16x32xf32>
      %c0_20 = arith.constant 0 : index
      %c0_21 = arith.constant 0 : index
      %28 = vector.load %arg8[%c0_20, %c0_21] : memref<16x32xf32, #tpu.memory_space<vmem>>, vector<16x32xf32>
      tpu.vector_store %arg8[%c0_20, %c0_21], %27 {strides = array<i32>} : memref<16x32xf32, #tpu.memory_space<vmem>>, vector<16x32xf32>,
    } else {
    }
    %c0 = arith.constant 0 : index
    %c0_1 = arith.constant 0 : index
    %3 = vector.load %arg2[%c0, %c0_1] : memref<16x32xf32, #tpu.memory_space<vmem>>, vector<16x32xf32>
    %c0_2 = arith.constant 0 : index
    %c0_3 = arith.constant 0 : index
    %4 = vector.load %arg3[%c0_2, %c0_3] : memref<32x64xf32, #tpu.memory_space<vmem>>, vector<32x64xf32>
    %cst = arith.constant dense<0.000000e+00> : vector<16x64xf32>
    %5 = tpu.matmul %3, %4, %cst {dimension_numbers = #tpu.dot_dimension_numbers<[1], [0], [0], [1], [0, 0, 1, 1], [], []>} : vector<16x32xf32>, vector<32x64xf32>, vector<16x64xf32> -> vector<16x64xf32>
    %c0_4 = arith.constant 0 : index
    %c0_5 = arith.constant 0 : index
    %6 = vector.load %arg4[%c0_4, %c0_5] : memref<1x64xf32, #tpu.memory_space<vmem>>, vector<1x64xf32>
    %7 = vector.broadcast %6 : vector<1x64xf32> to vector<16x64xf32>
    %8 = arith.addf %5, %7 : vector<16x64xf32>
    %cst_6 = arith.constant 5.000000e-01 : f32
    %9 = vector.broadcast %cst_6 : f32 to vector<16x64xf32>
    %10 = arith.mulf %9, %8 : vector<16x64xf32>
    %cst_7 = arith.constant 0.707106769 : f32
    %11 = vector.broadcast %cst_7 : f32 to vector<16x64xf32>
    %12 = arith.mulf %8, %11 : vector<16x64xf32>
    %13 = math.erf %12 : vector<16x64xf32>
    %cst_8 = arith.constant 1.000000e+00 : f32
    %14 = vector.broadcast %cst_8 : f32 to vector<16x64xf32>
    %15 = arith.addf %14, %13 : vector<16x64xf32>
    %16 = arith.mulf %10, %15 : vector<16x64xf32>
    %c0_9 = arith.constant 0 : index
    %c0_10 = arith.constant 0 : index
    %17 = vector.load %arg8[%c0_9, %c0_10] : memref<16x32xf32, #tpu.memory_space<vmem>>, vector<16x32xf32>
    %c0_11 = arith.constant 0 : index
    %c0_12 = arith.constant 0 : index
    %18 = vector.load %arg5[%c0_11, %c0_12] : memref<64x32xf32, #tpu.memory_space<vmem>>, vector<64x32xf32>
    %cst_13 = arith.constant dense<0.000000e+00> : vector<16x32xf32>
    %19 = tpu.matmul %16, %18, %cst_13 {dimension_numbers = #tpu.dot_dimension_numbers<[1], [0], [0], [1], [0, 0, 1, 1], [], []>} : vector<16x64xf32>, vector<64x32xf32>, vector<16x32xf32> -> vector<16x32xf32>
    %20 = arith.addf %17, %19 : vector<16x32xf32>
    %c0_14 = arith.constant 0 : index
    %c0_15 = arith.constant 0 : index
    %21 = vector.load %arg8[%c0_14, %c0_15] : memref<16x32xf32, #tpu.memory_space<vmem>>, vector<16x32xf32>
    tpu.vector_store %arg8[%c0_14, %c0_15], %20 {strides = array<i32>} : memref<16x32xf32, #tpu.memory_space<vmem>>, vector<16x32xf32>,
    %c0_i32_16 = arith.constant 0 : i32
    %22 = arith.cmpi eq, %arg1, %c0_i32_16 : i32
    %23 = arith.extui %22 : i1 to i32
    %c0_i32_17 = arith.constant 0 : i32
    %24 = arith.cmpi ne, %23, %c0_i32_17 : i32
    scf.if %24 {
      %c0_18 = arith.constant 0 : index
      %c0_19 = arith.constant 0 : index
      %25 = vector.load %arg8[%c0_18, %c0_19] : memref<16x32xf32, #tpu.memory_space<vmem>>, vector<16x32xf32>
      %c0_20 = arith.constant 0 : index
      %c0_21 = arith.constant 0 : index
      %26 = vector.load %arg7[%c0_20, %c0_21] : memref<16x32xf32, #tpu.memory_space<vmem>>, vector<16x32xf32>
      tpu.vector_store %arg7[%c0_20, %c0_21], %25 {strides = array<i32>} : memref<16x32xf32, #tpu.memory_space<vmem>>, vector<16x32xf32>,
    } else {
    }
    return
  }
  func.func @transform_0(%arg0: i32, %arg1: i32) -> (i32, i32) {
    %c0_i32 = arith.constant 0 : i32
    %c0_i32_0 = arith.constant 0 : i32
    return %arg0, %c0_i32 : i32, i32
  }
  func.func @transform_1(%arg0: i32, %arg1: i32) -> (i32, i32) {
    %c0_i32 = arith.constant 0 : i32
    %c0_i32_0 = arith.constant 0 : i32
    return %c0_i32, %arg1 : i32, i32
  }
  func.func @transform_2(%arg0: i32, %arg1: i32) -> (i32, i32) {
    %c0_i32 = arith.constant 0 : i32
    %c0_i32_0 = arith.constant 0 : i32
    return %c0_i32, %arg1 : i32, i32
  }
  func.func @transform_3(%arg0: i32, %arg1: i32) -> (i32, i32) {
    %c0_i32 = arith.constant 0 : i32
    %c0_i32_0 = arith.constant 0 : i32
    return %arg1, %c0_i32 : i32, i32
  }
  func.func @transform_4(%arg0: i32, %arg1: i32) -> (i32, i32) {
    %c0_i32 = arith.constant 0 : i32
    %c0_i32_0 = arith.constant 0 : i32
    %c0_i32_1 = arith.constant 0 : i32
    return %c0_i32, %c0_i32_0 : i32, i32
  }
  func.func @transform_5(%arg0: i32, %arg1: i32) -> (i32, i32) {
    %c0_i32 = arith.constant 0 : i32
    %c0_i32_0 = arith.constant 0 : i32
    return %arg0, %c0_i32 : i32, i32
  }
}

</mosaic_0001>

<bundles_post_ra>
// kernel: mlp_pallas.1
= control target key start
LH: loop header
LB: loop body
LE: loop exit
PB: predicated region body
PF: predicated region fallthrough
CT: control target
= control target key end

     0   :  { %vm32_vm0 = vcmask 261120   ;;  %s432_s0 = inlined_call_operand.vmem [shape: f32[16,32], index: 0, kind: input, shape index: {}]   ;;  %s433_s1 = inlined_call_operand.vmem [shape: f32[32,64], index: 1, kind: input, shape index: {}]   ;;  %s434_s2 = inlined_call_operand.vmem [shape: f32[1,64], index: 2, kind: input, shape index: {}]   ;;  %s435_s3 = inlined_call_operand.vmem [shape: f32[64,32], index: 3, kind: input, shape index: {}]   ;;  %s436_s4 = inlined_call_operand.vmem [shape: f32[1,32], index: 4, kind: input, shape index: {}]   ;;  %s437_s5 = inlined_call_operand.hbm [shape: f32[16,32], index: 5, kind: output, shape index: {}]  }
   0x1   :  { %v40_v0 = vld [vmem:[%s433_s1 + $0x18] sm:$0xff]  ;;  %v39_v1 = vld [vmem:[%s433_s1 + $0x10] sm:$0xff]  ;;  %v35_v2 = vld [vmem:[%s432_s0] sm:$0xff] }
   0x2   :  { %281 = vmatprep.subr.mxu0 %v40_v0  ;;  %v38_v3 = vld [vmem:[%s433_s1 + $0x8] sm:$0xff]  ;;  %289 = vmatprep.mubr.msk.f32.mxu0 %vm32_vm0, %v35_v2 }
   0x3   :  { %282 = vmatpush3.msra.mxu0 %v40_v0 }
   0x4   :  { %10 = vsyncpa [#allocation4], 0  ;;  %283 = vmatprep.subr.mxu0 %v39_v1  ;;  %v37_v4 = vld [vmem:[%s433_s1] sm:$0xff]  ;;  %v36_v5 = vld [vmem:[%s432_s0 + $0x8] sm:$0xff]  ;;  %vm150_vm1 = vcmask 523264  }
   0x5   :  { %284 = vmatpush3.msra.mxu0 %v39_v1  ;;  %v149_v6 = vld [vmem:[%s435_s3 + $0x38] sm:$0xff]  ;;  %v148_v7 = vld [vmem:[%s435_s3 + $0x30] sm:$0xff]  ;;  %v147_v8 = vld [vmem:[%s435_s3 + $0x28] sm:$0xff] }
   0x6   :  { %285 = vmatprep.subr.mxu0 %v38_v3  ;;  %292 = vmatprep.subr.mxu1 %v149_v6  ;;  %v146_v9 = vld [vmem:[%s435_s3 + $0x20] sm:$0xff]  ;;  %v145_v10 = vld [vmem:[%s435_s3 + $0x18] sm:$0xff]  ;;  %v144_v11 = vld [vmem:[%s435_s3 + $0x10] sm:$0xff] }
   0x7   :  { %286 = vmatpush3.msra.mxu0 %v38_v3  ;;  %293 = vmatpush3.msra.mxu1 %v149_v6  ;;  %v143_v12 = vld [vmem:[%s435_s3 + $0x8] sm:$0xff]  ;;  %v142_v13 = vld [vmem:[%s435_s3] sm:$0xff] }
   0x8   :  { %287 = vmatprep.subr.mxu0 %v37_v4  ;;  %294 = vmatprep.subr.mxu1 %v148_v7  ;;  %v259_v14 = vld [vmem:[%s436_s4] ss:$0 sm:$0xff] }
   0x9   :  { %288 = vmatpush3.msra.mxu0 %v37_v4  ;;  %295 = vmatpush3.msra.mxu1 %v148_v7  ;;  %34 = vst.msk [vmem:[#allocation2 + $0x8] sm:$0xff] %vm32_vm0, %v259_v14  ;;  %33 = vst.msk [vmem:[#allocation2] sm:$0xff] %vm32_vm0, %v259_v14  ;;  %v260_v15 = vld [vmem:[%s434_s2] ss:$0 sm:$0xff]  ;;  %s340_s2 = smov [#allocation3]  }
   0xa   :  { %290 = vmatmul.mubr.msk.f32.vlgmr.msra.gmra.mxu0 %vm32_vm0, %v36_v5  ;;  %296 = vmatprep.subr.mxu1 %v147_v8  ;;  %s248_s3 = sshll.u32 %s340_s2, 4  ;;  %s249_s3 = int_to_ptr.vmem [resolvable:$true] %s248_s3 }
   0xb   :  { %297 = vmatpush3.msra.mxu1 %v147_v8  ;;  %s318_s4 = scalar_lea.vmem %s249_s3, 256  ;;  %p323_p1 = scmp.lt.s32.totalorder %s249_s3, %s249_s3 }
   0xc   :  { %298 = vmatprep.subr.mxu1 %v146_v9  ;;  %p319_p0 = scmp.ne.s32.totalorder %s249_s3, %s318_s4  ;;  %p324_p2 = scmp.lt.s32.totalorder %s318_s4, %s318_s4 }
   0xd   :  { %299 = vmatpush3.msra.mxu1 %v146_v9 }
   0xe   :  { %300 = vmatprep.subr.mxu1 %v145_v10  ;;  %p325_p3 = por %p324_p2, %p323_p1 }
   0xf   :  { %301 = vmatpush3.msra.mxu1 %v145_v10 }
  0x10   :  { %302 = vmatprep.subr.mxu1 %v144_v11  ;;  %v141_v30 = vld [vmem:[#allocation2 + $0x8] sm:$0xff]  ;;  %v140_v32 = vld [vmem:[#allocation2] sm:$0xff]  ;;  %p326_p4 = pnand %p325_p3, %p319_p0 }
  0x11   :  { %303 = vmatpush3.msra.mxu1 %v144_v11 }
  0x12   :  { %304 = vmatprep.subr.mxu1 %v143_v12 }
  0x13   :  { %305 = vmatpush3.msra.mxu1 %v143_v12 }
  0x14   :  { %306 = vmatprep.subr.mxu1 %v142_v13 }
  0x15   :  { %307 = vmatpush3.msra.mxu1 %v142_v13 }
  0xca   :  { %v291_v16 = vpop.f32.mrf.mxu0 }
  0xcb   :  { %v127_v17 = vadd.f32 %v291_v16, %v260_v15 }
  0xcc   :  { %v121_v18 = vpop.f32.mrf.mxu0 }
  0xcd   :  { %v133_v19 = vmul.f32 0.70710677, %v127_v17  ;;  %v122_v20 = vadd.f32 %v260_v15, %v121_v18  ;;  %v131_v27 = vmul.f32 0.5, %v127_v17 }
  0xcf   :  { %314 = verf.f32 %v133_v19  ;;  %v132_v21 = vmul.f32 0.70710677, %v122_v20  ;;  %v130_v25 = vmul.f32 0.5, %v122_v20 }
  0xd1   :  { %316 = verf.f32 %v132_v21 }
  0xdc   :  { %v315_v22 = vpop.eup %314 }
  0xdd   :  { %v137_v24 = vadd.f32 1.0, %v315_v22 }
  0xde   :  { %v317_v23 = vpop.eup %316 }
  0xdf   :  { %v136_v26 = vadd.f32 1.0, %v317_v23  ;;  %v139_v29 = vmul.f32 %v137_v24, %v131_v27 }
  0xe1   :  { %v138_v28 = vmul.f32 %v136_v26, %v130_v25 }
  0xe3   :  { %308 = vmatprep.mubr.msk.f32.mxu1 %vm150_vm1, %v138_v28 }
  0xe4   :  { %309 = vmatmul.mubr.msk.f32.vlgmr.msra.gmra.mxu1 %vm150_vm1, %v139_v29 }
 0x1a4   :  { %v310_v31 = vpop.f32.mrf.mxu1 }
 0x1a5   :  { %v233_v33 = vadd.f32 %v310_v31, %v141_v30 }
 0x1a6   :  { %v223_v34 = vpop.f32.mrf.mxu1 }
 0x1a7   :  { %235 = vst.msk [vmem:[#allocation2 + $0x8] sm:$0xff] %vm32_vm0, %v233_v33  ;;  %v232_v35 = vadd.f32 %v223_v34, %v140_v32 }
 0x1a9   :  { %234 = vst.msk [vmem:[#allocation2] sm:$0xff] %vm32_vm0, %v232_v35 }
 0x1ae   :  { %v240_v36 = vld [vmem:[#allocation2 + $0x8] sm:$0xff] }
 0x1af   :  { %242 = vst.msk [vmem:[#allocation3 + $0x8] sm:$0xff] %vm32_vm0, %v240_v36 }
 0x1b0   :  { %v239_v37 = vld [vmem:[#allocation2] sm:$0xff] }
 0x1b1   :  { %241 = vst.msk [vmem:[#allocation3] sm:$0xff] %vm32_vm0, %v239_v37 }
 0x1b2   :  { %329 = shalt.err (!%p326_p4)
}
 0x1b3   :  { %s341_s23 = smov 128   ;;  %s342_s24 = smov 8  }
 0x1b4   :  { %254 = dma.vmem_to_hbm [thread:$0]  %s249_s3, 256, %s437_s5, [#allocation4], %s341_s23, %s341_s23, %s342_s24  }
 0x1b5   :  { %338 = dma.done.wait [#allocation4], 256  }
 0x1b6   :  { %339 = vsyncadd [#allocation4], 4294967040 }
 0x1b7   :  { %258 = vsyncpa [#allocation4], 1 }

</bundles_post_ra>
